<compile_context>
chip_gen: v7x
topology: tpu7x:2x2x1
jax: 0.10.0
libtpu: 0.0.40
codegen_flags: <defaults>
</compile_context>

<pallas_src>
import jax
import jax.numpy as jnp
from jax import lax
from jax.experimental import pallas as pl
from jax.experimental.pallas import tpu as pltpu

EPS = 1e-5


def _round_up(x, m):
    return (x + m - 1) // m * m


def _vmem_limit_bytes():
    """Hardware-derived scoped-VMEM limit, leaving ~1/3 headroom for Mosaic scratch."""
    try:
        cap = int(pltpu.get_tpu_info().vmem_capacity_bytes)
    except Exception:
        cap = 64 * 1024 * 1024  # conservative fallback: v7x per-TensorCore VMEM
    return max(16 * 1024 * 1024, cap * 2 // 3)


def _choose_c_tile(c_pad, per_channel_bytes, budget_bytes):
    """Largest multiple-of-8 channel tile that divides c_pad and fits the budget.
    Returns 0 if even an 8-channel slab does not fit (caller uses two-pass path)."""
    max_ct = budget_bytes // per_channel_bytes
    if max_ct >= c_pad:
        return c_pad
    ct = (int(max_ct) // 8) * 8
    while ct >= 8:
        if c_pad % ct == 0:
            return ct
        ct -= 8
    return 0


def _prefer_multiple_grid_steps(c_pad, c_tile):
    """If the channel grid would be a single step, split it so v7x's two TensorCores
    both get work under dimension_semantics=('parallel',)."""
    if c_pad // c_tile >= 2 or c_pad < 16:
        return c_tile
    half = (c_tile // 2) // 8 * 8
    while half >= 8:
        if c_pad % half == 0:
            return half
        half -= 8
    return c_tile


def _choose_hw_tile(hw_pad, per_lane_bytes, budget_bytes):
    """Largest multiple-of-128 spatial tile that divides hw_pad and fits the budget."""
    max_hw = min(budget_bytes // per_lane_bytes, hw_pad)
    hw = (int(max_hw) // 128) * 128
    while hw >= 128:
        if hw_pad % hw == 0:
            return hw
        hw -= 128
    # TODO(synk): also tile the batch axis for extreme N where even (N, 8, 128) blocks
    # exceed the VMEM budget.
    return 128


# ----------------------------- kernels --------------------------------------


def _make_fused_bn_kernel(n_batch, inv_count):
    """Single-pass path: whole (N, c_tile, HW) channel slab in one VMEM block."""
    unroll = n_batch <= 8

    def kernel(x_ref, gamma_ref, beta_ref, o_ref):
        c_tile = x_ref.shape[1]
        zeros = jnp.zeros((c_tile, 1), jnp.float32)

        def stats_body(n, carry):
            s, ss = carry
            xn = x_ref[n].astype(jnp.float32)                  # (c_tile, HW)
            s = s + jnp.sum(xn, axis=-1, keepdims=True)
            ss = ss + jnp.sum(xn * xn, axis=-1, keepdims=True)
            return s, ss

        s, ss = lax.fori_loop(0, n_batch, stats_body, (zeros, zeros), unroll=unroll)

        mean = s * inv_count                                    # (c_tile, 1)
        var = jnp.maximum(ss * inv_count - mean * mean, 0.0)
        inv_std = lax.rsqrt(var + EPS)
        scale = gamma_ref[0].astype(jnp.float32) * inv_std      # (c_tile, 1)
        shift = beta_ref[0].astype(jnp.float32) - mean * scale

        def norm_body(n, carry):
            xn = x_ref[n].astype(jnp.float32)
            o_ref[n] = (xn * scale + shift).astype(o_ref.dtype)
            return carry

        lax.fori_loop(0, n_batch, norm_body, 0, unroll=unroll)

    return kernel


def _make_stats_kernel(n_batch):
    """Two-pass path, pass 1: accumulate per-channel sum / sum-of-squares over the
    HW grid axis (marked 'arbitrary'); output blocks stay resident across it."""
    unroll = n_batch <= 8

    def kernel(x_ref, sum_ref, sumsq_ref):
        @pl.when(pl.program_id(1) == 0)
        def _():
            sum_ref[...] = jnp.zeros_like(sum_ref)
            sumsq_ref[...] = jnp.zeros_like(sumsq_ref)

        c_tile = x_ref.shape[1]
        zeros = jnp.zeros((c_tile, 1), jnp.float32)

        def body(n, carry):
            s, ss = carry
            xn = x_ref[n].astype(jnp.float32)                   # (c_tile, hw_tile)
            s = s + jnp.sum(xn, axis=-1, keepdims=True)
            ss = ss + jnp.sum(xn * xn, axis=-1, keepdims=True)
            return s, ss

        s, ss = lax.fori_loop(0, n_batch, body, (zeros, zeros), unroll=unroll)
        sum_ref[...] += s
        sumsq_ref[...] += ss

    return kernel


def _make_norm_kernel(n_batch):
    """Two-pass path, pass 2: y = x * scale + shift with folded per-channel params."""
    unroll = n_batch <= 8

    def kernel(x_ref, scale_ref, shift_ref, o_ref):
        scale = scale_ref[0]                                    # (c_tile, 1) f32
        shift = shift_ref[0]

        def body(n, carry):
            xn = x_ref[n].astype(jnp.float32)
            o_ref[n] = (xn * scale + shift).astype(o_ref.dtype)
            return carry

        lax.fori_loop(0, n_batch, body, 0, unroll=unroll)

    return kernel


# ----------------------------- wrapper --------------------------------------


def batchnorm2d(x_nchw, gamma, beta, *, tile_budget_bytes=None, force_two_pass=False):
    """BatchNorm2d forward with batch statistics (PyTorch training-mode default).

    x_nchw: (N, C, H, W); gamma, beta: (C,)
    """
    N, C, H, W = x_nchw.shape
    HW = H * W
    C_pad = _round_up(C, 8)
    HW_pad = _round_up(HW, 128)

    vmem_limit = _vmem_limit_bytes()
    tile_budget = tile_budget_bytes if tile_budget_bytes is not None else vmem_limit

    # Free metadata reshape to a lane-dense (N, C, HW) layout; zero-pad sublane
    # (channel) axis to 8 and lane (spatial) axis to 128.  Zeros do not perturb the
    # sums, and the real element count is used for the mean/variance divisor.
    x3 = x_nchw.reshape(N, C, HW)
    if C_pad != C or HW_pad != HW:
        x3 = jnp.pad(x3, ((0, 0), (0, C_pad - C), (0, HW_pad - HW)))
    gamma_p = jnp.pad(gamma.astype(jnp.float32), (0, C_pad - C))
    beta_p = jnp.pad(beta.astype(jnp.float32), (0, C_pad - C))

    itemsize = jnp.dtype(x3.dtype).itemsize
    count = float(N * HW)  # real (unpadded) element count per channel
    inv_count = 1.0 / count

    # Fast path feasibility: in/out double-buffered pipeline copies of the block plus
    # ~3 (c_tile, HW_pad) f32 temps live inside the kernel.
    per_channel_bytes = 4 * N * HW_pad * itemsize + 3 * HW_pad * 4
    c_tile = _choose_c_tile(C_pad, per_channel_bytes, tile_budget)

    if c_tile >= 8 and not force_two_pass:
        # -------- single-pass fast path (1R + 1W HBM traffic) --------
        c_tile = _prefer_multiple_grid_steps(C_pad, c_tile)
        grid = (C_pad // c_tile,)
        out3 = pl.pallas_call(
            _make_fused_bn_kernel(N, inv_count),
            out_shape=jax.ShapeDtypeStruct((N, C_pad, HW_pad), x3.dtype),
            grid_spec=pltpu.PrefetchScalarGridSpec(
                num_scalar_prefetch=0,
                grid=grid,
                in_specs=[
                    pl.BlockSpec((N, c_tile, HW_pad), lambda i: (0, i, 0)),
                    pl.BlockSpec((1, c_tile, 1), lambda i: (0, i, 0)),
                    pl.BlockSpec((1, c_tile, 1), lambda i: (0, i, 0)),
                ],
                out_specs=pl.BlockSpec((N, c_tile, HW_pad), lambda i: (0, i, 0)),
            ),
            compiler_params=pltpu.CompilerParams(
                dimension_semantics=("parallel",),
                vmem_limit_bytes=vmem_limit,
            ),
            cost_estimate=pl.CostEstimate(
                flops=5 * N * C_pad * HW_pad,
                transcendentals=C_pad,
                bytes_accessed=2 * x3.size * itemsize,
            ),
        )(x3, gamma_p.reshape(1, C_pad, 1), beta_p.reshape(1, C_pad, 1))
    else:
        # -------- two-pass fallback (2R + 1W), VMEM bounded for any N*H*W --------
        ct = 8
        per_lane_bytes = 4 * N * ct * itemsize + 3 * ct * 4
        hw_tile = _choose_hw_tile(HW_pad, per_lane_bytes, tile_budget)
        grid = (C_pad // ct, HW_pad // hw_tile)

        sums, sumsqs = pl.pallas_call(
            _make_stats_kernel(N),
            out_shape=(
                jax.ShapeDtypeStruct((C_pad, 1), jnp.float32),
                jax.ShapeDtypeStruct((C_pad, 1), jnp.float32),
            ),
            grid_spec=pltpu.PrefetchScalarGridSpec(
                num_scalar_prefetch=0,
                grid=grid,
                in_specs=[pl.BlockSpec((N, ct, hw_tile), lambda c, l: (0, c, l))],
                out_specs=(
                    pl.BlockSpec((ct, 1), lambda c, l: (c, 0)),
                    pl.BlockSpec((ct, 1), lambda c, l: (c, 0)),
                ),
            ),
            compiler_params=pltpu.CompilerParams(
                dimension_semantics=("parallel", "arbitrary"),
                vmem_limit_bytes=vmem_limit,
            ),
            cost_estimate=pl.CostEstimate(
                flops=3 * N * C_pad * HW_pad,
                transcendentals=0,
                bytes_accessed=x3.size * itemsize,
            ),
        )(x3)

        mean = sums * inv_count                              # (C_pad, 1) f32
        var = jnp.maximum(sumsqs * inv_count - mean * mean, 0.0)
        inv_std = lax.rsqrt(var + EPS)
        scale = gamma_p.reshape(C_pad, 1) * inv_std
        shift = beta_p.reshape(C_pad, 1) - mean * scale

        out3 = pl.pallas_call(
            _make_norm_kernel(N),
            out_shape=jax.ShapeDtypeStruct((N, C_pad, HW_pad), x3.dtype),
            grid_spec=pltpu.PrefetchScalarGridSpec(
                num_scalar_prefetch=0,
                grid=grid,
                in_specs=[
                    pl.BlockSpec((N, ct, hw_tile), lambda c, l: (0, c, l)),
                    pl.BlockSpec((1, ct, 1), lambda c, l: (0, c, 0)),
                    pl.BlockSpec((1, ct, 1), lambda c, l: (0, c, 0)),
                ],
                out_specs=pl.BlockSpec((N, ct, hw_tile), lambda c, l: (0, c, l)),
            ),
            compiler_params=pltpu.CompilerParams(
                dimension_semantics=("parallel", "parallel"),
                vmem_limit_bytes=vmem_limit,
            ),
            cost_estimate=pl.CostEstimate(
                flops=2 * N * C_pad * HW_pad,
                transcendentals=0,
                bytes_accessed=2 * x3.size * itemsize,
            ),
        )(x3, scale.reshape(1, C_pad, 1), shift.reshape(1, C_pad, 1))

    out3 = out3[:, :C, :HW]
    return out3.reshape(N, C, H, W)


def _reference(x, gamma, beta):
    c = x.shape[1]
    mean = jnp.mean(x, axis=(0, 2, 3), keepdims=True)
    var = jnp.mean((x - mean) ** 2, axis=(0, 2, 3), keepdims=True)
    return (x - mean) / jnp.sqrt(var + EPS) * gamma.reshape(1, c, 1, 1) + beta.reshape(
        1, c, 1, 1
    )


if __name__ == "__main__":
    key = jax.random.PRNGKey(0)
    k1, k2, k3, k4 = jax.random.split(key, 4)

    # Test 1: module shape with default nn.BatchNorm2d init (weight=1, bias=0),
    # exercises the single-pass fast path (C=4 is padded to 8 sublanes).
    N, C, H, W = 2, 4, 16, 16
    x = jax.random.normal(k1, (N, C, H, W), dtype=jnp.float32)
    gamma = jnp.ones((C,), dtype=jnp.float32)
    beta = jnp.zeros((C,), dtype=jnp.float32)
    y = batchnorm2d(x, gamma, beta)
    jax.block_until_ready(y)
    assert jnp.allclose(y, _reference(x, gamma, beta), atol=1e-4, rtol=1e-4), (
        "fast-path mismatch vs reference"
    )

    # Test 2: odd C / HW (channel + lane padding) and the two-pass fallback path,
    # forced with a tiny tile budget so stats accumulate across multiple HW tiles.
    N2, C2, H2, W2 = 2, 5, 15, 15
    x2 = jax.random.normal(k2, (N2, C2, H2, W2), dtype=jnp.float32)
    gamma2 = jax.random.normal(k3, (C2,), dtype=jnp.float32)
    beta2 = jax.random.normal(k4, (C2,), dtype=jnp.float32)
    y2 = batchnorm2d(
        x2, gamma2, beta2, tile_budget_bytes=64 * 1024, force_two_pass=True
    )
    jax.block_until_ready(y2)
    assert jnp.allclose(y2, _reference(x2, gamma2, beta2), atol=1e-4, rtol=1e-4), (
        "two-pass mismatch vs reference"
    )

    print("KERNEL_OK")
</pallas_src>

<mosaic_0001>
module attributes {stable_mosaic.version = 11 : i64} {
  func.func @kernel(%arg0: i32, %arg1: memref<2x8x256xf32, #tpu.memory_space<vmem>>, %arg2: memref<1x8x1xf32, #tpu.memory_space<vmem>>, %arg3: memref<1x8x1xf32, #tpu.memory_space<vmem>>, %arg4: memref<2x8x256xf32, #tpu.memory_space<vmem>>) attributes {dimension_semantics = [#tpu.dimension_semantics<parallel>], iteration_bounds = array<i64: 1>, scalar_prefetch = 0 : i64, scratch_operands = 0 : i64, tpu.core_type = #tpu.core_type<tc>, window_params = [{transform_indices = @transform_0, window_bounds = array<i64: 2, 8, 256>}, {transform_indices = @transform_1, window_bounds = array<i64: 1, 8, 1>}, {transform_indices = @transform_2, window_bounds = array<i64: 1, 8, 1>}, {transform_indices = @transform_3, window_bounds = array<i64: 2, 8, 256>}]} {
    %cst = arith.constant 0.000000e+00 : f32
    %0 = vector.broadcast %cst : f32 to vector<8x1xf32>
    %c0_i32 = arith.constant 0 : i32
    %1 = arith.index_cast %c0_i32 : i32 to index
    %c0 = arith.constant 0 : index
    %c0_0 = arith.constant 0 : index
    %2 = vector.load %arg1[%1, %c0, %c0_0] : memref<2x8x256xf32, #tpu.memory_space<vmem>>, vector<1x8x256xf32>
    %3 = vector.shape_cast %2 : vector<1x8x256xf32> to vector<8x256xf32>
    %cst_1 = arith.constant dense<0.000000e+00> : vector<8xf32>
    %4 = vector.multi_reduction <add>, %3, %cst_1 [1] : vector<8x256xf32> to vector<8xf32>
    %5 = vector.shape_cast %4 : vector<8xf32> to vector<8x1xf32>
    %6 = arith.addf %0, %5 : vector<8x1xf32>
    %7 = arith.mulf %3, %3 : vector<8x256xf32>
    %cst_2 = arith.constant dense<0.000000e+00> : vector<8xf32>
    %8 = vector.multi_reduction <add>, %7, %cst_2 [1] : vector<8x256xf32> to vector<8xf32>
    %9 = vector.shape_cast %8 : vector<8xf32> to vector<8x1xf32>
    %10 = arith.addf %0, %9 : vector<8x1xf32>
    %c1_i32 = arith.constant 1 : i32
    %11 = arith.index_cast %c1_i32 : i32 to index
    %c0_3 = arith.constant 0 : index
    %c0_4 = arith.constant 0 : index
    %12 = vector.load %arg1[%11, %c0_3, %c0_4] : memref<2x8x256xf32, #tpu.memory_space<vmem>>, vector<1x8x256xf32>
    %13 = vector.shape_cast %12 : vector<1x8x256xf32> to vector<8x256xf32>
    %cst_5 = arith.constant dense<0.000000e+00> : vector<8xf32>
    %14 = vector.multi_reduction <add>, %13, %cst_5 [1] : vector<8x256xf32> to vector<8xf32>
    %15 = vector.shape_cast %14 : vector<8xf32> to vector<8x1xf32>
    %16 = arith.addf %6, %15 : vector<8x1xf32>
    %17 = arith.mulf %13, %13 : vector<8x256xf32>
    %cst_6 = arith.constant dense<0.000000e+00> : vector<8xf32>
    %18 = vector.multi_reduction <add>, %17, %cst_6 [1] : vector<8x256xf32> to vector<8xf32>
    %19 = vector.shape_cast %18 : vector<8xf32> to vector<8x1xf32>
    %20 = arith.addf %10, %19 : vector<8x1xf32>
    %c2_i32 = arith.constant 2 : i32
    %cst_7 = arith.constant 0.001953125 : f32
    %21 = vector.broadcast %cst_7 : f32 to vector<8x1xf32>
    %22 = arith.mulf %16, %21 : vector<8x1xf32>
    %cst_8 = arith.constant 0.001953125 : f32
    %23 = vector.broadcast %cst_8 : f32 to vector<8x1xf32>
    %24 = arith.mulf %20, %23 : vector<8x1xf32>
    %25 = arith.mulf %22, %22 : vector<8x1xf32>
    %26 = arith.subf %24, %25 : vector<8x1xf32>
    %cst_9 = arith.constant 0.000000e+00 : f32
    %27 = vector.broadcast %cst_9 : f32 to vector<8x1xf32>
    %28 = arith.maximumf %26, %27 : vector<8x1xf32>
    %cst_10 = arith.constant 9.99999974E-6 : f32
    %29 = vector.broadcast %cst_10 : f32 to vector<8x1xf32>
    %30 = arith.addf %28, %29 : vector<8x1xf32>
    %31 = math.rsqrt %30 : vector<8x1xf32>
    %c0_11 = arith.constant 0 : index
    %c0_12 = arith.constant 0 : index
    %c0_13 = arith.constant 0 : index
    %32 = vector.load %arg2[%c0_11, %c0_12, %c0_13] : memref<1x8x1xf32, #tpu.memory_space<vmem>>, vector<1x8x1xf32>
    %33 = vector.shape_cast %32 : vector<1x8x1xf32> to vector<8x1xf32>
    %34 = arith.mulf %33, %31 : vector<8x1xf32>
    %c0_14 = arith.constant 0 : index
    %c0_15 = arith.constant 0 : index
    %c0_16 = arith.constant 0 : index
    %35 = vector.load %arg3[%c0_14, %c0_15, %c0_16] : memref<1x8x1xf32, #tpu.memory_space<vmem>>, vector<1x8x1xf32>
    %36 = vector.shape_cast %35 : vector<1x8x1xf32> to vector<8x1xf32>
    %37 = arith.mulf %22, %34 : vector<8x1xf32>
    %38 = arith.subf %36, %37 : vector<8x1xf32>
    %c0_i32_17 = arith.constant 0 : i32
    %39 = arith.index_cast %c0_i32_17 : i32 to index
    %c0_18 = arith.constant 0 : index
    %c0_19 = arith.constant 0 : index
    %40 = vector.load %arg1[%39, %c0_18, %c0_19] : memref<2x8x256xf32, #tpu.memory_space<vmem>>, vector<1x8x256xf32>
    %41 = vector.shape_cast %40 : vector<1x8x256xf32> to vector<8x256xf32>
    %42 = vector.broadcast %34 : vector<8x1xf32> to vector<8x256xf32>
    %43 = arith.mulf %41, %42 : vector<8x256xf32>
    %44 = vector.broadcast %38 : vector<8x1xf32> to vector<8x256xf32>
    %45 = arith.addf %43, %44 : vector<8x256xf32>
    %46 = arith.index_cast %c0_i32_17 : i32 to index
    %c0_20 = arith.constant 0 : index
    %c0_21 = arith.constant 0 : index
    %47 = vector.load %arg4[%46, %c0_20, %c0_21] : memref<2x8x256xf32, #tpu.memory_space<vmem>>, vector<1x8x256xf32>
    %48 = vector.shape_cast %47 : vector<1x8x256xf32> to vector<8x256xf32>
    %49 = vector.shape_cast %45 : vector<8x256xf32> to vector<1x8x256xf32>
    tpu.vector_store %arg4[%46, %c0_20, %c0_21], %49 {strides = array<i32>} : memref<2x8x256xf32, #tpu.memory_space<vmem>>, vector<1x8x256xf32>,
    %c1_i32_22 = arith.constant 1 : i32
    %50 = arith.index_cast %c1_i32_22 : i32 to index
    %c0_23 = arith.constant 0 : index
    %c0_24 = arith.constant 0 : index
    %51 = vector.load %arg1[%50, %c0_23, %c0_24] : memref<2x8x256xf32, #tpu.memory_space<vmem>>, vector<1x8x256xf32>
    %52 = vector.shape_cast %51 : vector<1x8x256xf32> to vector<8x256xf32>
    %53 = vector.broadcast %34 : vector<8x1xf32> to vector<8x256xf32>
    %54 = arith.mulf %52, %53 : vector<8x256xf32>
    %55 = vector.broadcast %38 : vector<8x1xf32> to vector<8x256xf32>
    %56 = arith.addf %54, %55 : vector<8x256xf32>
    %57 = arith.index_cast %c1_i32_22 : i32 to index
    %c0_25 = arith.constant 0 : index
    %c0_26 = arith.constant 0 : index
    %58 = vector.load %arg4[%57, %c0_25, %c0_26] : memref<2x8x256xf32, #tpu.memory_space<vmem>>, vector<1x8x256xf32>
    %59 = vector.shape_cast %58 : vector<1x8x256xf32> to vector<8x256xf32>
    %60 = vector.shape_cast %56 : vector<8x256xf32> to vector<1x8x256xf32>
    tpu.vector_store %arg4[%57, %c0_25, %c0_26], %60 {strides = array<i32>} : memref<2x8x256xf32, #tpu.memory_space<vmem>>, vector<1x8x256xf32>,
    %c2_i32_27 = arith.constant 2 : i32
    return
  }
  func.func @transform_0(%arg0: i32) -> (i32, i32, i32) {
    %c0_i32 = arith.constant 0 : i32
    %c0_i32_0 = arith.constant 0 : i32
    %c0_i32_1 = arith.constant 0 : i32
    return %c0_i32, %arg0, %c0_i32_0 : i32, i32, i32
  }
  func.func @transform_1(%arg0: i32) -> (i32, i32, i32) {
    %c0_i32 = arith.constant 0 : i32
    %c0_i32_0 = arith.constant 0 : i32
    %c0_i32_1 = arith.constant 0 : i32
    return %c0_i32, %arg0, %c0_i32_0 : i32, i32, i32
  }
  func.func @transform_2(%arg0: i32) -> (i32, i32, i32) {
    %c0_i32 = arith.constant 0 : i32
    %c0_i32_0 = arith.constant 0 : i32
    %c0_i32_1 = arith.constant 0 : i32
    return %c0_i32, %arg0, %c0_i32_0 : i32, i32, i32
  }
  func.func @transform_3(%arg0: i32) -> (i32, i32, i32) {
    %c0_i32 = arith.constant 0 : i32
    %c0_i32_0 = arith.constant 0 : i32
    %c0_i32_1 = arith.constant 0 : i32
    return %c0_i32, %arg0, %c0_i32_0 : i32, i32, i32
  }
}

</mosaic_0001>

<bundles_post_ra>
// kernel: tpu_custom_call.1
= control target key start
LH: loop header
LB: loop body
LE: loop exit
PB: predicated region body
PF: predicated region fallthrough
CT: control target
= control target key end

     0   :  { %8 = vsyncpa [#allocation3], 0  ;;  %s226_s0 = inlined_call_operand.hbm [shape: f32[2,8,256], index: 0, kind: input, shape index: {}]   ;;  %s227_s1 = inlined_call_operand.vmem [shape: f32[1,8,1], index: 1, kind: input, shape index: {}]   ;;  %s228_s2 = inlined_call_operand.vmem [shape: f32[1,8,1], index: 2, kind: input, shape index: {}]   ;;  %s229_s3 = inlined_call_operand.hbm [shape: f32[2,8,256], index: 3, kind: output, shape index: {}]  }
   0x1   :  { %9 = vsyncpa [#allocation4], 0  ;;  %s165_s12 = smov [#allocation2]   ;;  %s117_s16 = scalar_lea.hbm %s226_s0, 512 }
   0x2   :  { %s15_s13 = sshll.u32 %s165_s12, 4  ;;  %p118_p0 = scmp.ne.s32.totalorder %s226_s0, %s117_s16  ;;  %s16_s13 = int_to_ptr.vmem [resolvable:$true] %s15_s13 }
   0x3   :  { %p121_p1 = scmp.lt.u32.totalorder %s117_s16, %s226_s0 }
   0x5   :  { %p123_p2 = pnand %p121_p1, %p118_p0 }
   0x7   :  { %126 = shalt.err (!%p123_p2)
}
   0x8   :  { %s127_s21 = scalar_lea.vmem %s16_s13, 512  ;;  %p132_p4 = scmp.lt.s32.totalorder %s16_s13, %s16_s13 }
   0x9   :  { %p128_p3 = scmp.ne.s32.totalorder %s16_s13, %s127_s21  ;;  %p133_p5 = scmp.lt.s32.totalorder %s127_s21, %s127_s21 }
   0xb   :  { %p134_p6 = por %p133_p5, %p132_p4 }
   0xd   :  { %p135_p7 = pnand %p134_p6, %p128_p3 }
   0xf   :  { %138 = shalt.err (!%p135_p7)
}
  0x10   :  { %s166_s22 = smov 256   ;;  %s167_s23 = smov 16  }
  0x11   :  { %21 = dma.hbm_to_vmem [thread:$0]  %s226_s0, 512, %s16_s13, [#allocation3], %s166_s22, %s166_s22, %s167_s23  }
  0x12   :  { %161 = dma.done.wait [#allocation3], 512  }
  0x13   :  { %162 = vsyncadd [#allocation3], 4294966784  ;;  %v29_v0 = vld [vmem:[#allocation2] sm:$0xff]  ;;  %v30_v1 = vld [vmem:[#allocation2 + $0x8] sm:$0xff]  ;;  %v168_v12 = vmov 0   ;;  %s169_s29 = smov [#allocation5]  }
  0x14   :  { %v42_v2 = vld [vmem:[#allocation2 + $0x10] sm:$0xff]  ;;  %v31_v3 = vadd.f32 %v30_v1, %v29_v0  ;;  %v35_v4 = vmul.f32 %v29_v0, %v29_v0  ;;  %v36_v5 = vmul.f32 %v30_v1, %v30_v1  ;;  %v43_v6 = vld [vmem:[#allocation2 + $0x18] sm:$0xff]  ;;  %113 = vset.pattern.permute.xlu0 %v168_v12  ;;  %114 = vset.pattern.permute.xlu1 %v168_v12  ;;  %v61_v25 = vld [vmem:[%s227_s1] sm:$0xff]  ;;  %s96_s30 = sshll.u32 %s169_s29, 4  ;;  %s97_s30 = int_to_ptr.vmem [resolvable:$true] %s96_s30 }
  0x15   :  { %v48_v7 = vmul.f32 %v42_v2, %v42_v2  ;;  %v49_v8 = vmul.f32 %v43_v6, %v43_v6  ;;  %v44_v10 = vadd.f32 %v43_v6, %v42_v2  ;;  %v63_v28 = vld [vmem:[%s228_s2] sm:$0xff]  ;;  %s139_s1 = scalar_lea.vmem %s97_s30, 512  ;;  %p144_p9 = scmp.lt.s32.totalorder %s97_s30, %s97_s30 }
  0x16   :  { %32 = vadd.xlane.f32.xlu0 %v31_v3  ;;  %v37_v9 = vadd.f32 %v36_v5, %v35_v4  ;;  %p140_p8 = scmp.ne.s32.totalorder %s97_s30, %s139_s1  ;;  %p145_p10 = scmp.lt.s32.totalorder %s139_s1, %s139_s1 }
  0x17   :  { %v50_v11 = vadd.f32 %v49_v8, %v48_v7 }
  0x18   :  { %38 = vadd.xlane.f32.xlu1 %v37_v9  ;;  %p146_p11 = por %p145_p10, %p144_p9 }
  0x1a   :  { %45 = vadd.xlane.f32.xlu0 %v44_v10  ;;  %p147_p12 = pnand %p146_p11, %p140_p8 }
  0x1c   :  { %51 = vadd.xlane.f32.xlu1 %v50_v11 }
  0xa3   :  { %v33_v13 = vpop.xlane.xlu0 %32 }
  0xa5   :  { %v39_v14 = vpop.xlane.xlu1 %38 }
  0xa7   :  { %v46_v15 = vpop.xlane.xlu0 %45 }
  0xa8   :  { %v47_v16 = vadd.f32 %v46_v15, %v33_v13 }
  0xa9   :  { %v52_v17 = vpop.xlane.xlu1 %51 }
  0xaa   :  { %v54_v18 = vmul.f32 0.001953125, %v47_v16  ;;  %v53_v19 = vadd.f32 %v52_v17, %v39_v14 }
  0xac   :  { %v56_v20 = vmul.f32 %v54_v18, %v54_v18  ;;  %v55_v21 = vmul.f32 0.001953125, %v53_v19 }
  0xae   :  { %v57_v22 = vsub.f32 %v55_v21, %v56_v20 }
  0xb0   :  { %v58_v23 = vmax.f32 %v57_v22, 0.0 }
  0xb2   :  { %v59_v24 = vadd.f32 1e-05, %v58_v23 }
  0xb4   :  { %115 = vrsqrt.f32 %v59_v24 }
  0xbe   :  { %v116_v26 = vpop.eup %115 }
  0xbf   :  { %v62_v27 = vmul.f32 %v116_v26, %v61_v25 }
  0xc1   :  { %68 = vperm.xlu0 %113, %v62_v27   ;;  %v64_v29 = vmul.f32 %v62_v27, %v54_v18 }
  0xc3   :  { %v65_v30 = vsub.f32 %v63_v28, %v64_v29 }
  0xc5   :  { %75 = vperm.xlu1 %114, %v65_v30  }
 0x140   :  { %v69_v31 = vpop.permute.xlu0 %68 }
 0x141   :  { %v71_v32 = vmul.f32 %v69_v31, %v29_v0  ;;  %v72_v33 = vmul.f32 %v69_v31, %v30_v1  ;;  %v84_v34 = vmul.f32 %v69_v31, %v42_v2  ;;  %v85_v35 = vmul.f32 %v69_v31, %v43_v6 }
 0x144   :  { %v76_v36 = vpop.permute.xlu1 %75 }
 0x145   :  { %v78_v37 = vadd.f32 %v76_v36, %v71_v32  ;;  %v79_v38 = vadd.f32 %v76_v36, %v72_v33  ;;  %v86_v39 = vadd.f32 %v84_v34, %v76_v36  ;;  %v87_v40 = vadd.f32 %v85_v35, %v76_v36 }
 0x147   :  { %80 = vst [vmem:[#allocation5] sm:$0xff] %v78_v37  ;;  %81 = vst [vmem:[#allocation5 + $0x8] sm:$0xff] %v79_v38 }
 0x148   :  { %89 = vst [vmem:[#allocation5 + $0x10] sm:$0xff] %v86_v39  ;;  %90 = vst [vmem:[#allocation5 + $0x18] sm:$0xff] %v87_v40 }
 0x149   :  { %150 = shalt.err (!%p147_p12)
}
 0x14a   :  { %s151_s5 = scalar_lea.hbm %s229_s3, 512 }
 0x14b   :  { %p152_p13 = scmp.ne.s32.totalorder %s229_s3, %s151_s5  ;;  %p155_p0 = scmp.lt.u32.totalorder %s151_s5, %s229_s3 }
 0x14d   :  { %p157_p1 = pnand %p155_p0, %p152_p13 }
 0x14f   :  { %160 = shalt.err (!%p157_p1)
}
 0x150   :  { %102 = dma.vmem_to_hbm [thread:$0]  %s97_s30, 512, %s229_s3, [#allocation4], %s166_s22, %s166_s22, %s167_s23  }
 0x151   :  { %163 = dma.done.wait [#allocation4], 512  }
 0x152   :  { %164 = vsyncadd [#allocation4], 4294966784 }
 0x153   :  { %106 = vsyncpa [#allocation3], 1 }
 0x154   :  { %107 = vsyncpa [#allocation4], 1 }

</bundles_post_ra>
